<compile_context>
chip_gen: v6e
topology: v6e:2x2x1
jax: 0.10.0
libtpu: 0.0.40
codegen_flags: <defaults>
</compile_context>

<pallas_src>
import functools

import jax
import jax.numpy as jnp
from jax import lax
from jax.experimental import pallas as pl
from jax.experimental.pallas import tpu as pltpu

BN_EPS = 1e-5
LANE = 128      # vreg lane width: channel tiles kept lane-dense
SUBLANE = 8     # sublane granularity for batch tiling


def _round_up(x, m):
    return (x + m - 1) // m * m


def _vmem_limit(block_bytes):
    # Headroom above the double-buffered working set; stays below v7x's 64 MiB.
    return int(min(48 * 2**20, max(32 * 2**20, block_bytes + 8 * 2**20)))


# ---------------------------------------------------------------------------
# Path A: whole batch resident per E-tile (exact two-pass BatchNorm stats).
# ---------------------------------------------------------------------------
def _fi_bn_fullbatch_kernel(emb_ref, gamma_ref, beta_ref, out_ref):
    # emb_ref: (F, B, TE)   gamma/beta: (1, TE)   out_ref: (B, TE)
    num_fields = emb_ref.shape[0]

    def body(f, carry):
        s, sq = carry
        x = emb_ref[f].astype(jnp.float32)      # one (B, TE) slab per field
        return s + x, sq + x * x

    zero = jnp.zeros(out_ref.shape, jnp.float32)
    s, sq = lax.fori_loop(0, num_fields, body, (zero, zero), unroll=True)

    # FM pairwise interaction: 1/2 * ((sum_f x)^2 - sum_f x^2)
    cross = 0.5 * (s * s - sq)                  # (B, TE)

    # BatchNorm1d (training mode): per-channel stats over the batch,
    # biased variance, two-pass (centered) for numerical safety.
    mean = jnp.mean(cross, axis=0, keepdims=True)
    centered = cross - mean
    var = jnp.mean(centered * centered, axis=0, keepdims=True)
    inv_std = lax.rsqrt(var + BN_EPS)

    out = gamma_ref[...] * (centered * inv_std) + beta_ref[...]
    out_ref[...] = out.astype(out_ref.dtype)


# ---------------------------------------------------------------------------
# Path B: batch is tiled too -> per-channel partial sums + separate apply pass.
# ---------------------------------------------------------------------------
def _cross_stats_kernel(emb_ref, cross_ref, stats_ref):
    # emb_ref: (F, TB, TE); cross_ref: (TB, TE) f32; stats_ref: (2, TE) f32
    num_fields = emb_ref.shape[0]

    def body(f, carry):
        s, sq = carry
        x = emb_ref[f].astype(jnp.float32)
        return s + x, sq + x * x

    zero = jnp.zeros(cross_ref.shape, jnp.float32)
    s, sq = lax.fori_loop(0, num_fields, body, (zero, zero), unroll=True)
    cross = 0.5 * (s * s - sq)
    cross_ref[...] = cross

    part = jnp.concatenate(
        [jnp.sum(cross, axis=0, keepdims=True),
         jnp.sum(cross * cross, axis=0, keepdims=True)], axis=0)   # (2, TE)

    @pl.when(pl.program_id(1) == 0)                 # B axis is innermost / "arbitrary"
    def _():
        stats_ref[...] = jnp.zeros_like(stats_ref)

    stats_ref[...] += part


def _bn_apply_kernel(cross_ref, stats_ref, gamma_ref, beta_ref, out_ref, *, batch):
    inv_n = 1.0 / float(batch)
    mean = stats_ref[0:1, :] * inv_n
    var = jnp.maximum(stats_ref[1:2, :] * inv_n - mean * mean, 0.0)
    inv_std = lax.rsqrt(var + BN_EPS)
    out = gamma_ref[...] * ((cross_ref[...] - mean) * inv_std) + beta_ref[...]
    out_ref[...] = out.astype(out_ref.dtype)


# ---------------------------------------------------------------------------
# Wrapper
# ---------------------------------------------------------------------------
def feature_interaction(emb_stk, gamma, beta, *, tile_e=None, tile_b=None,
                        vmem_budget_bytes=12 * 2**20):
    """emb_stk: (F, B, E); gamma/beta: (E,). Returns (B, E) in emb_stk.dtype."""
    num_fields, batch, emb = emb_stk.shape
    out_dtype = emb_stk.dtype
    in_itemsize = jnp.dtype(emb_stk.dtype).itemsize

    # Lane-dense channel axis: pad E up to a multiple of 128 so stores are full
    # unmasked vst's; padded channels are sliced off at the end (they produce 0).
    e_pad = _round_up(emb, LANE)
    if e_pad != emb:
        emb_stk = jnp.pad(emb_stk, ((0, 0), (0, 0), (0, e_pad - emb)))
        gamma = jnp.pad(gamma, (0, e_pad - emb), constant_values=1.0)
        beta = jnp.pad(beta, (0, e_pad - emb))
    gamma2d = gamma.reshape(1, e_pad).astype(jnp.float32)
    beta2d = beta.reshape(1, e_pad).astype(jnp.float32)

    # ---- tile selection against a per-generation-safe VMEM budget ----------
    def fullb_bytes(te):
        # double-buffered input block + double-buffered output + fp32 temps
        return 2 * num_fields * batch * te * in_itemsize + 8 * batch * te * 4

    e_candidates = sorted(
        (t for t in range(LANE, e_pad + 1, LANE) if e_pad % t == 0), reverse=True)
    if tile_e is None:
        tile_e = next((t for t in e_candidates if fullb_bytes(t) <= vmem_budget_bytes),
                      LANE)

    if tile_b is None and fullb_bytes(tile_e) > vmem_budget_bytes:
        # Whole-batch blocks too big (e.g. v7x 64 MiB VMEM): tile B as well.
        def tiledb_bytes(tb):
            return 2 * num_fields * tb * tile_e * in_itemsize + 8 * tb * tile_e * 4
        b_candidates = sorted(
            (t for t in range(SUBLANE, batch, SUBLANE) if batch % t == 0), reverse=True)
        tile_b = next((t for t in b_candidates if tiledb_bytes(t) <= vmem_budget_bytes),
                      None)

    n_e = e_pad // tile_e

    if tile_b is None or tile_b >= batch:
        # -------- Path A: E-grid only, full batch per block -----------------
        out = pl.pallas_call(
            _fi_bn_fullbatch_kernel,
            out_shape=jax.ShapeDtypeStruct((batch, e_pad), out_dtype),
            grid=(n_e,),
            in_specs=[
                pl.BlockSpec((num_fields, batch, tile_e), lambda j: (0, 0, j)),
                pl.BlockSpec((1, tile_e), lambda j: (0, j)),
                pl.BlockSpec((1, tile_e), lambda j: (0, j)),
            ],
            out_specs=pl.BlockSpec((batch, tile_e), lambda j: (0, j)),
            compiler_params=pltpu.CompilerParams(
                dimension_semantics=("parallel",),
                vmem_limit_bytes=_vmem_limit(fullb_bytes(tile_e)),
            ),
        )(emb_stk, gamma2d, beta2d)
        return out[:, :emb]

    # -------- Path B: (E, B) grid with partial-sum BatchNorm statistics -----
    n_b = batch // tile_b
    blk_bytes = 2 * num_fields * tile_b * tile_e * in_itemsize + 8 * tile_b * tile_e * 4

    cross, stats = pl.pallas_call(
        _cross_stats_kernel,
        out_shape=(jax.ShapeDtypeStruct((batch, e_pad), jnp.float32),
                   jax.ShapeDtypeStruct((2, e_pad), jnp.float32)),
        grid=(n_e, n_b),
        in_specs=[pl.BlockSpec((num_fields, tile_b, tile_e), lambda e, b: (0, b, e))],
        out_specs=(pl.BlockSpec((tile_b, tile_e), lambda e, b: (b, e)),
                   pl.BlockSpec((2, tile_e), lambda e, b: (0, e))),
        compiler_params=pltpu.CompilerParams(
            dimension_semantics=("parallel", "arbitrary"),
            vmem_limit_bytes=_vmem_limit(blk_bytes),
        ),
    )(emb_stk)

    out = pl.pallas_call(
        functools.partial(_bn_apply_kernel, batch=batch),
        out_shape=jax.ShapeDtypeStruct((batch, e_pad), out_dtype),
        grid=(n_e, n_b),
        in_specs=[
            pl.BlockSpec((tile_b, tile_e), lambda e, b: (b, e)),
            pl.BlockSpec((2, tile_e), lambda e, b: (0, e)),
            pl.BlockSpec((1, tile_e), lambda e, b: (0, e)),
            pl.BlockSpec((1, tile_e), lambda e, b: (0, e)),
        ],
        out_specs=pl.BlockSpec((tile_b, tile_e), lambda e, b: (b, e)),
        compiler_params=pltpu.CompilerParams(
            dimension_semantics=("parallel", "parallel"),
            vmem_limit_bytes=_vmem_limit(8 * tile_b * tile_e * 4),
        ),
    )(cross, stats, gamma2d, beta2d)
    return out[:, :emb]


def feature_interaction_ref(emb_stk, gamma, beta):
    """Pure-JAX reference mirroring the PyTorch forward (training-mode BN)."""
    x = emb_stk.astype(jnp.float32)
    cross = 0.5 * (jnp.sum(x, axis=0) ** 2 - jnp.sum(x * x, axis=0))
    mean = jnp.mean(cross, axis=0, keepdims=True)
    var = jnp.mean((cross - mean) ** 2, axis=0, keepdims=True)
    return gamma[None, :] * (cross - mean) / jnp.sqrt(var + BN_EPS) + beta[None, :]


# TODO(synk): BatchNorm1d running_mean/running_var buffer updates (momentum) are
# not emitted; only the training-mode forward output is produced.

if __name__ == "__main__":
    key = jax.random.PRNGKey(0)
    k1, k2, k3, k4 = jax.random.split(key, 4)

    # Test 1: small module-consistent shapes -> Path A (E-only grid, full batch
    # resident, channel axis padded 32 -> 128 for lane-dense stores).
    F1, B1, E1 = 8, 16, 32
    emb1 = jax.random.normal(k1, (F1, B1, E1), dtype=jnp.float32)
    gamma1 = jnp.ones((E1,), dtype=jnp.float32)   # BatchNorm1d default init
    beta1 = jnp.zeros((E1,), dtype=jnp.float32)
    out1 = jax.block_until_ready(feature_interaction(emb1, gamma1, beta1))
    ref1 = feature_interaction_ref(emb1, gamma1, beta1)
    assert out1.shape == (B1, E1)
    assert jnp.allclose(out1, ref1, atol=1e-4, rtol=1e-4), "Path A mismatch vs reference"

    # Test 2: force the batch-tiled partial-sum BatchNorm path (Path B).
    F2, B2, E2 = 6, 32, 256
    emb2 = jax.random.normal(k2, (F2, B2, E2), dtype=jnp.float32)
    gamma2 = 1.0 + 0.1 * jax.random.normal(k3, (E2,), dtype=jnp.float32)
    beta2 = 0.1 * jax.random.normal(k4, (E2,), dtype=jnp.float32)
    out2 = jax.block_until_ready(
        feature_interaction(emb2, gamma2, beta2, tile_e=128, tile_b=16))
    ref2 = feature_interaction_ref(emb2, gamma2, beta2)
    assert out2.shape == (B2, E2)
    assert jnp.allclose(out2, ref2, atol=1e-4, rtol=1e-4), "Path B mismatch vs reference"

    print("KERNEL_OK")
</pallas_src>

<mosaic_0001>
module attributes {stable_mosaic.version = 11 : i64} {
  func.func @_fi_bn_fullbatch_kernel(%arg0: i32, %arg1: memref<8x16x128xf32, #tpu.memory_space<vmem>>, %arg2: memref<1x128xf32, #tpu.memory_space<vmem>>, %arg3: memref<1x128xf32, #tpu.memory_space<vmem>>, %arg4: memref<16x128xf32, #tpu.memory_space<vmem>>) attributes {dimension_semantics = [#tpu.dimension_semantics<parallel>], iteration_bounds = array<i64: 1>, scalar_prefetch = 0 : i64, scratch_operands = 0 : i64, tpu.core_type = #tpu.core_type<tc>, window_params = [{transform_indices = @transform_0, window_bounds = array<i64: 8, 16, 128>}, {transform_indices = @transform_1, window_bounds = array<i64: 1, 128>}, {transform_indices = @transform_2, window_bounds = array<i64: 1, 128>}, {transform_indices = @transform_3, window_bounds = array<i64: 16, 128>}]} {
    %cst = arith.constant 0.000000e+00 : f32
    %0 = vector.broadcast %cst : f32 to vector<16x128xf32>
    %c0_i32 = arith.constant 0 : i32
    %1 = arith.index_cast %c0_i32 : i32 to index
    %c0 = arith.constant 0 : index
    %c0_0 = arith.constant 0 : index
    %2 = vector.load %arg1[%1, %c0, %c0_0] : memref<8x16x128xf32, #tpu.memory_space<vmem>>, vector<1x16x128xf32>
    %3 = vector.shape_cast %2 : vector<1x16x128xf32> to vector<16x128xf32>
    %4 = arith.addf %0, %3 : vector<16x128xf32>
    %5 = arith.mulf %3, %3 : vector<16x128xf32>
    %6 = arith.addf %0, %5 : vector<16x128xf32>
    %c1_i32 = arith.constant 1 : i32
    %7 = arith.index_cast %c1_i32 : i32 to index
    %c0_1 = arith.constant 0 : index
    %c0_2 = arith.constant 0 : index
    %8 = vector.load %arg1[%7, %c0_1, %c0_2] : memref<8x16x128xf32, #tpu.memory_space<vmem>>, vector<1x16x128xf32>
    %9 = vector.shape_cast %8 : vector<1x16x128xf32> to vector<16x128xf32>
    %10 = arith.addf %4, %9 : vector<16x128xf32>
    %11 = arith.mulf %9, %9 : vector<16x128xf32>
    %12 = arith.addf %6, %11 : vector<16x128xf32>
    %c2_i32 = arith.constant 2 : i32
    %13 = arith.index_cast %c2_i32 : i32 to index
    %c0_3 = arith.constant 0 : index
    %c0_4 = arith.constant 0 : index
    %14 = vector.load %arg1[%13, %c0_3, %c0_4] : memref<8x16x128xf32, #tpu.memory_space<vmem>>, vector<1x16x128xf32>
    %15 = vector.shape_cast %14 : vector<1x16x128xf32> to vector<16x128xf32>
    %16 = arith.addf %10, %15 : vector<16x128xf32>
    %17 = arith.mulf %15, %15 : vector<16x128xf32>
    %18 = arith.addf %12, %17 : vector<16x128xf32>
    %c3_i32 = arith.constant 3 : i32
    %19 = arith.index_cast %c3_i32 : i32 to index
    %c0_5 = arith.constant 0 : index
    %c0_6 = arith.constant 0 : index
    %20 = vector.load %arg1[%19, %c0_5, %c0_6] : memref<8x16x128xf32, #tpu.memory_space<vmem>>, vector<1x16x128xf32>
    %21 = vector.shape_cast %20 : vector<1x16x128xf32> to vector<16x128xf32>
    %22 = arith.addf %16, %21 : vector<16x128xf32>
    %23 = arith.mulf %21, %21 : vector<16x128xf32>
    %24 = arith.addf %18, %23 : vector<16x128xf32>
    %c4_i32 = arith.constant 4 : i32
    %25 = arith.index_cast %c4_i32 : i32 to index
    %c0_7 = arith.constant 0 : index
    %c0_8 = arith.constant 0 : index
    %26 = vector.load %arg1[%25, %c0_7, %c0_8] : memref<8x16x128xf32, #tpu.memory_space<vmem>>, vector<1x16x128xf32>
    %27 = vector.shape_cast %26 : vector<1x16x128xf32> to vector<16x128xf32>
    %28 = arith.addf %22, %27 : vector<16x128xf32>
    %29 = arith.mulf %27, %27 : vector<16x128xf32>
    %30 = arith.addf %24, %29 : vector<16x128xf32>
    %c5_i32 = arith.constant 5 : i32
    %31 = arith.index_cast %c5_i32 : i32 to index
    %c0_9 = arith.constant 0 : index
    %c0_10 = arith.constant 0 : index
    %32 = vector.load %arg1[%31, %c0_9, %c0_10] : memref<8x16x128xf32, #tpu.memory_space<vmem>>, vector<1x16x128xf32>
    %33 = vector.shape_cast %32 : vector<1x16x128xf32> to vector<16x128xf32>
    %34 = arith.addf %28, %33 : vector<16x128xf32>
    %35 = arith.mulf %33, %33 : vector<16x128xf32>
    %36 = arith.addf %30, %35 : vector<16x128xf32>
    %c6_i32 = arith.constant 6 : i32
    %37 = arith.index_cast %c6_i32 : i32 to index
    %c0_11 = arith.constant 0 : index
    %c0_12 = arith.constant 0 : index
    %38 = vector.load %arg1[%37, %c0_11, %c0_12] : memref<8x16x128xf32, #tpu.memory_space<vmem>>, vector<1x16x128xf32>
    %39 = vector.shape_cast %38 : vector<1x16x128xf32> to vector<16x128xf32>
    %40 = arith.addf %34, %39 : vector<16x128xf32>
    %41 = arith.mulf %39, %39 : vector<16x128xf32>
    %42 = arith.addf %36, %41 : vector<16x128xf32>
    %c7_i32 = arith.constant 7 : i32
    %43 = arith.index_cast %c7_i32 : i32 to index
    %c0_13 = arith.constant 0 : index
    %c0_14 = arith.constant 0 : index
    %44 = vector.load %arg1[%43, %c0_13, %c0_14] : memref<8x16x128xf32, #tpu.memory_space<vmem>>, vector<1x16x128xf32>
    %45 = vector.shape_cast %44 : vector<1x16x128xf32> to vector<16x128xf32>
    %46 = arith.addf %40, %45 : vector<16x128xf32>
    %47 = arith.mulf %45, %45 : vector<16x128xf32>
    %48 = arith.addf %42, %47 : vector<16x128xf32>
    %c8_i32 = arith.constant 8 : i32
    %49 = arith.mulf %46, %46 : vector<16x128xf32>
    %50 = arith.subf %49, %48 : vector<16x128xf32>
    %cst_15 = arith.constant 5.000000e-01 : f32
    %51 = vector.broadcast %cst_15 : f32 to vector<16x128xf32>
    %52 = arith.mulf %51, %50 : vector<16x128xf32>
    %cst_16 = arith.constant dense<0.000000e+00> : vector<128xf32>
    %53 = vector.multi_reduction <add>, %52, %cst_16 [0] : vector<16x128xf32> to vector<128xf32>
    %54 = vector.shape_cast %53 : vector<128xf32> to vector<1x128xf32>
    %cst_17 = arith.constant 1.600000e+01 : f32
    %55 = vector.broadcast %cst_17 : f32 to vector<1x128xf32>
    %56 = arith.divf %54, %55 : vector<1x128xf32>
    %57 = vector.broadcast %56 : vector<1x128xf32> to vector<16x128xf32>
    %58 = arith.subf %52, %57 : vector<16x128xf32>
    %59 = arith.mulf %58, %58 : vector<16x128xf32>
    %cst_18 = arith.constant dense<0.000000e+00> : vector<128xf32>
    %60 = vector.multi_reduction <add>, %59, %cst_18 [0] : vector<16x128xf32> to vector<128xf32>
    %61 = vector.shape_cast %60 : vector<128xf32> to vector<1x128xf32>
    %cst_19 = arith.constant 1.600000e+01 : f32
    %62 = vector.broadcast %cst_19 : f32 to vector<1x128xf32>
    %63 = arith.divf %61, %62 : vector<1x128xf32>
    %cst_20 = arith.constant 9.99999974E-6 : f32
    %64 = vector.broadcast %cst_20 : f32 to vector<1x128xf32>
    %65 = arith.addf %63, %64 : vector<1x128xf32>
    %66 = math.rsqrt %65 : vector<1x128xf32>
    %c0_21 = arith.constant 0 : index
    %c0_22 = arith.constant 0 : index
    %67 = vector.load %arg2[%c0_21, %c0_22] : memref<1x128xf32, #tpu.memory_space<vmem>>, vector<1x128xf32>
    %68 = vector.broadcast %66 : vector<1x128xf32> to vector<16x128xf32>
    %69 = arith.mulf %58, %68 : vector<16x128xf32>
    %70 = vector.broadcast %67 : vector<1x128xf32> to vector<16x128xf32>
    %71 = arith.mulf %70, %69 : vector<16x128xf32>
    %c0_23 = arith.constant 0 : index
    %c0_24 = arith.constant 0 : index
    %72 = vector.load %arg3[%c0_23, %c0_24] : memref<1x128xf32, #tpu.memory_space<vmem>>, vector<1x128xf32>
    %73 = vector.broadcast %72 : vector<1x128xf32> to vector<16x128xf32>
    %74 = arith.addf %71, %73 : vector<16x128xf32>
    %c0_25 = arith.constant 0 : index
    %c0_26 = arith.constant 0 : index
    %75 = vector.load %arg4[%c0_25, %c0_26] : memref<16x128xf32, #tpu.memory_space<vmem>>, vector<16x128xf32>
    tpu.vector_store %arg4[%c0_25, %c0_26], %74 {strides = array<i32>} : memref<16x128xf32, #tpu.memory_space<vmem>>, vector<16x128xf32>,
    return
  }
  func.func @transform_0(%arg0: i32) -> (i32, i32, i32) {
    %c0_i32 = arith.constant 0 : i32
    %c0_i32_0 = arith.constant 0 : i32
    %c0_i32_1 = arith.constant 0 : i32
    return %c0_i32, %c0_i32_0, %arg0 : i32, i32, i32
  }
  func.func @transform_1(%arg0: i32) -> (i32, i32) {
    %c0_i32 = arith.constant 0 : i32
    %c0_i32_0 = arith.constant 0 : i32
    return %c0_i32, %arg0 : i32, i32
  }
  func.func @transform_2(%arg0: i32) -> (i32, i32) {
    %c0_i32 = arith.constant 0 : i32
    %c0_i32_0 = arith.constant 0 : i32
    return %c0_i32, %arg0 : i32, i32
  }
  func.func @transform_3(%arg0: i32) -> (i32, i32) {
    %c0_i32 = arith.constant 0 : i32
    %c0_i32_0 = arith.constant 0 : i32
    return %c0_i32, %arg0 : i32, i32
  }
}

</mosaic_0001>

<bundles_post_ra>
// kernel: tpu_custom_call.1
= control target key start
LH: loop header
LB: loop body
LE: loop exit
PB: predicated region body
PF: predicated region fallthrough
CT: control target
= control target key end

     0   :  { %8 = vsyncpa [#allocation3], 0  ;;  %s262_s0 = inlined_call_operand.hbm [shape: f32[8,16,128], index: 0, kind: input, shape index: {}]   ;;  %s263_s1 = inlined_call_operand.vmem [shape: f32[1,128], index: 1, kind: input, shape index: {}]   ;;  %s264_s2 = inlined_call_operand.vmem [shape: f32[1,128], index: 2, kind: input, shape index: {}]   ;;  %s265_s3 = inlined_call_operand.hbm [shape: f32[16,128], index: 3, kind: output, shape index: {}]  }
   0x1   :  { %9 = vsyncpa [#allocation4], 0  ;;  %s220_s12 = smov [#allocation2]  }
   0x2   :  { %s15_s13 = sshll.u32 %s220_s12, 4  ;;  %s16_s13 = int_to_ptr.vmem [resolvable:$true] %s15_s13 }
   0x3   :  { %s184_s14 = scalar_lea.vmem %s16_s13, 2048  ;;  %p189_p1 = scmp.lt.s32.totalorder %s16_s13, %s16_s13 }
   0x4   :  { %p185_p0 = scmp.ne.s32.totalorder %s16_s13, %s184_s14  ;;  %p190_p2 = scmp.lt.s32.totalorder %s184_s14, %s184_s14 }
   0x6   :  { %p191_p3 = por %p190_p2, %p189_p1 }
   0x8   :  { %p192_p4 = pnand %p191_p3, %p185_p0 }
   0xa   :  { %195 = shalt.err (!%p192_p4)
}
   0xb   :  { %s221_s15 = smov 128   ;;  %s222_s16 = smov 8  }
   0xc   :  { %21 = dma.hbm_to_vmem [thread:$0]  %s262_s0, 2048, %s16_s13, [#allocation3], %s221_s15, %s221_s15, %s222_s16  }
   0xd   :  { %216 = dma.done.wait [#allocation3], 2048  }
   0xe   :  { %217 = vsyncadd [#allocation3], 4294965248  ;;  %v29_v0 = vld [vmem:[#allocation2] sm:$0xff]  ;;  %v30_v1 = vld [vmem:[#allocation2 + $0x8] sm:$0xff]  ;;  %s223_s22 = smov [#allocation5]  }
   0xf   :  { %v38_v2 = vld [vmem:[#allocation2 + $0x10] sm:$0xff]  ;;  %v33_v3 = vmul.f32 %v29_v0, %v29_v0  ;;  %v34_v4 = vmul.f32 %v30_v1, %v30_v1  ;;  %v39_v5 = vld [vmem:[#allocation2 + $0x18] sm:$0xff]  ;;  %v47_v8 = vld [vmem:[#allocation2 + $0x20] sm:$0xff]  ;;  %s156_s23 = sshll.u32 %s223_s22, 4  ;;  %s157_s23 = int_to_ptr.vmem [resolvable:$true] %s156_s23 }
  0x10   :  { %v40_v6 = vadd.f32 %v38_v2, %v29_v0  ;;  %v42_v7 = vmul.f32 %v38_v2, %v38_v2  ;;  %v48_v9 = vld [vmem:[#allocation2 + $0x28] sm:$0xff]  ;;  %v41_v10 = vadd.f32 %v39_v5, %v30_v1  ;;  %v43_v11 = vmul.f32 %v39_v5, %v39_v5  ;;  %v56_v14 = vld [vmem:[#allocation2 + $0x30] sm:$0xff]  ;;  %v57_v15 = vld [vmem:[#allocation2 + $0x38] sm:$0xff]  ;;  %s196_s24 = scalar_lea.vmem %s157_s23, 256  ;;  %p201_p6 = scmp.lt.s32.totalorder %s157_s23, %s157_s23 }
  0x11   :  { %v51_v12 = vmul.f32 %v47_v8, %v47_v8  ;;  %v52_v13 = vmul.f32 %v48_v9, %v48_v9  ;;  %v65_v16 = vld [vmem:[#allocation2 + $0x40] sm:$0xff]  ;;  %v60_v19 = vmul.f32 %v56_v14, %v56_v14  ;;  %v66_v20 = vld [vmem:[#allocation2 + $0x48] sm:$0xff]  ;;  %v61_v23 = vmul.f32 %v57_v15, %v57_v15  ;;  %v74_v24 = vld [vmem:[#allocation2 + $0x50] sm:$0xff]  ;;  %p197_p5 = scmp.ne.s32.totalorder %s157_s23, %s196_s24  ;;  %p202_p7 = scmp.lt.s32.totalorder %s196_s24, %s196_s24 }
  0x12   :  { %v44_v17 = vadd.f32 %v42_v7, %v33_v3  ;;  %v49_v18 = vadd.f32 %v47_v8, %v40_v6  ;;  %v45_v21 = vadd.f32 %v43_v11, %v34_v4  ;;  %v50_v22 = vadd.f32 %v48_v9, %v41_v10  ;;  %v75_v28 = vld [vmem:[#allocation2 + $0x58] sm:$0xff]  ;;  %v83_v32 = vld [vmem:[#allocation2 + $0x60] sm:$0xff]  ;;  %v84_v36 = vld [vmem:[#allocation2 + $0x68] sm:$0xff] }
  0x13   :  { %v69_v27 = vmul.f32 %v65_v16, %v65_v16  ;;  %v70_v31 = vmul.f32 %v66_v20, %v66_v20  ;;  %v78_v35 = vmul.f32 %v74_v24, %v74_v24  ;;  %v79_v39 = vmul.f32 %v75_v28, %v75_v28  ;;  %v92_v40 = vld [vmem:[#allocation2 + $0x70] sm:$0xff]  ;;  %v93_v44 = vld [vmem:[#allocation2 + $0x78] sm:$0xff]  ;;  %p203_p8 = por %p202_p7, %p201_p6 }
  0x14   :  { %v53_v25 = vadd.f32 %v51_v12, %v44_v17  ;;  %v58_v26 = vadd.f32 %v56_v14, %v49_v18  ;;  %v54_v29 = vadd.f32 %v52_v13, %v45_v21  ;;  %v59_v30 = vadd.f32 %v57_v15, %v50_v22 }
  0x15   :  { %v87_v43 = vmul.f32 %v83_v32, %v83_v32  ;;  %v88_v47 = vmul.f32 %v84_v36, %v84_v36  ;;  %v96_v50 = vmul.f32 %v92_v40, %v92_v40  ;;  %v97_v53 = vmul.f32 %v93_v44, %v93_v44  ;;  %p204_p9 = pnand %p203_p8, %p197_p5 }
  0x16   :  { %v62_v33 = vadd.f32 %v60_v19, %v53_v25  ;;  %v67_v34 = vadd.f32 %v65_v16, %v58_v26  ;;  %v63_v37 = vadd.f32 %v61_v23, %v54_v29  ;;  %v68_v38 = vadd.f32 %v66_v20, %v59_v30 }
  0x18   :  { %v71_v41 = vadd.f32 %v69_v27, %v62_v33  ;;  %v76_v42 = vadd.f32 %v74_v24, %v67_v34  ;;  %v72_v45 = vadd.f32 %v70_v31, %v63_v37  ;;  %v77_v46 = vadd.f32 %v75_v28, %v68_v38  ;;  %v168_v24 = vld [vmem:[%s263_s1] ss:$0 sm:$0xff] }
  0x19   :  { %v169_v27 = vld [vmem:[%s264_s2] ss:$0 sm:$0xff] }
  0x1a   :  { %v80_v48 = vadd.f32 %v78_v35, %v71_v41  ;;  %v85_v49 = vadd.f32 %v83_v32, %v76_v42  ;;  %v81_v51 = vadd.f32 %v79_v39, %v72_v45  ;;  %v86_v52 = vadd.f32 %v84_v36, %v77_v46 }
  0x1c   :  { %v89_v54 = vadd.f32 %v87_v43, %v80_v48  ;;  %v94_v55 = vadd.f32 %v92_v40, %v85_v49  ;;  %v90_v56 = vadd.f32 %v88_v47, %v81_v51  ;;  %v95_v57 = vadd.f32 %v93_v44, %v86_v52 }
  0x1e   :  { %v98_v58 = vadd.f32 %v96_v50, %v89_v54  ;;  %v100_v59 = vmul.f32 %v94_v55, %v94_v55  ;;  %v99_v60 = vadd.f32 %v97_v53, %v90_v56  ;;  %v101_v61 = vmul.f32 %v95_v57, %v95_v57 }
  0x20   :  { %v102_v62 = vsub.f32 %v100_v59, %v98_v58  ;;  %v103_v63 = vsub.f32 %v101_v61, %v99_v60 }
  0x22   :  { %v104_v0 = vmul.f32 0.5, %v102_v62  ;;  %v105_v1 = vmul.f32 0.5, %v103_v63 }
  0x24   :  { %v106_v2 = vadd.f32 %v105_v1, %v104_v0 }
  0x26   :  { %v107_v3 = vrot.slane %v106_v2, 4 }
  0x28   :  { %v108_v4 = vadd.f32 %v107_v3, %v106_v2 }
  0x2a   :  { %v109_v5 = vrot.slane %v108_v4, 2 }
  0x2c   :  { %v110_v6 = vadd.f32 %v109_v5, %v108_v4 }
  0x2e   :  { %v111_v7 = vrot.slane %v110_v6, 1 }
  0x30   :  { %v112_v8 = vadd.f32 %v111_v7, %v110_v6 }
  0x32   :  { %v114_v9 = vmul.f32 0.0625, %v112_v8 }
  0x34   :  { %v115_v10 = vsub.f32 %v104_v0, %v114_v9  ;;  %v116_v11 = vsub.f32 %v105_v1, %v114_v9 }
  0x36   :  { %v117_v12 = vmul.f32 %v115_v10, %v115_v10  ;;  %v118_v13 = vmul.f32 %v116_v11, %v116_v11 }
  0x38   :  { %v119_v14 = vadd.f32 %v118_v13, %v117_v12 }
  0x3a   :  { %v120_v15 = vrot.slane %v119_v14, 4 }
  0x3c   :  { %v121_v16 = vadd.f32 %v120_v15, %v119_v14 }
  0x3e   :  { %v122_v17 = vrot.slane %v121_v16, 2 }
  0x40   :  { %v123_v18 = vadd.f32 %v122_v17, %v121_v16 }
  0x42   :  { %v124_v19 = vrot.slane %v123_v18, 1 }
  0x44   :  { %v125_v20 = vadd.f32 %v124_v19, %v123_v18 }
  0x46   :  { %v126_v21 = vmul.f32 0.0625, %v125_v20 }
  0x48   :  { %v127_v22 = vadd.f32 1e-05, %v126_v21 }
  0x4a   :  { %174 = vrsqrt.f32 %v127_v22 }
  0x57   :  { %v175_v23 = vpop.eup %174 }
  0x58   :  { %v130_v25 = vmul.f32 %v175_v23, %v115_v10  ;;  %v131_v26 = vmul.f32 %v175_v23, %v116_v11 }
  0x5a   :  { %v138_v28 = vmul.f32 %v168_v24, %v130_v25  ;;  %v139_v29 = vmul.f32 %v168_v24, %v131_v26 }
  0x5c   :  { %v147_v30 = vadd.f32 %v169_v27, %v138_v28  ;;  %v148_v31 = vadd.f32 %v169_v27, %v139_v29 }
  0x5e   :  { %149 = vst [vmem:[#allocation5] sm:$0xff] %v147_v30  ;;  %150 = vst [vmem:[#allocation5 + $0x8] sm:$0xff] %v148_v31 }
  0x5f   :  { %207 = shalt.err (!%p204_p9)
}
  0x60   :  { %162 = dma.vmem_to_hbm [thread:$0]  %s157_s23, 256, %s265_s3, [#allocation4], %s221_s15, %s221_s15, %s222_s16  }
  0x61   :  { %218 = dma.done.wait [#allocation4], 256  }
  0x62   :  { %219 = vsyncadd [#allocation4], 4294967040 }
  0x63   :  { %166 = vsyncpa [#allocation3], 1 }
  0x64   :  { %167 = vsyncpa [#allocation4], 1 }

</bundles_post_ra>
